<compile_context>
chip_gen: v5e
topology: v5e:2x2
jax: 0.10.0
libtpu: 0.0.40
codegen_flags: <defaults>
</compile_context>

<pallas_src>
import functools

import jax
import jax.numpy as jnp
from jax.experimental import pallas as pl
from jax.experimental.pallas import tpu as pltpu


def _round_up(x, m):
    return (x + m - 1) // m * m


def _pick_tile(n_pad, block):
    """Largest multiple of 128 <= block that divides n_pad (n_pad is a multiple of 128)."""
    t = min(block, n_pad)
    t = max(128, t - t % 128)
    while n_pad % t:
        t -= 128
    return t


# --------------------------------------------------------------------------- kernels

def sage_agg_kernel(c_ref, hw_ref, self_ref, invdeg_ref, o_ref, *, relu):
    """One GraphSAGE 'mean' layer row-tile: accumulate C @ HW over contraction (k) blocks.

    c_ref:      (tile_m, tile_k) bf16 edge counts
    hw_ref:     (tile_k, F_out)  bf16 pre-projected neighbor features (H @ W_neigh)
    self_ref:   (tile_m, F_out)  f32  H @ W_self + b (hoisted, k-invariant)
    invdeg_ref: (tile_m, 1)      f32  1 / in-degree
    o_ref:      (tile_m, F_out)  f32  output; doubles as the accumulator (resident along k)
    """
    k = pl.program_id(1)

    @pl.when(k == 0)
    def _init():
        o_ref[...] = jnp.zeros_like(o_ref)

    # bf16 x bf16 -> f32-accumulate: the full-rate MXU path on v5e/v6e/v7x.
    o_ref[...] += jnp.dot(c_ref[...], hw_ref[...], preferred_element_type=jnp.float32)

    @pl.when(k == pl.num_programs(1) - 1)
    def _finalize():
        out = o_ref[...] * invdeg_ref[...] + self_ref[...]
        if relu:
            out = jnp.maximum(out, 0.0)
        o_ref[...] = out


def edge_dot_kernel(hu_ref, hv_ref, o_ref):
    """Per-edge dot product on feature-major (F, TE) blocks -> lane-dense (1, TE)."""
    o_ref[...] = jnp.sum(hu_ref[...] * hv_ref[...], axis=0, keepdims=True)


# -------------------------------------------------------------------------- wrappers

def sage_layer(counts_p, inv_deg_p, h, w_self, w_neigh, b, *, relu, block_m, block_k):
    """counts_p: (Np, Np) bf16 edge counts (zero padded); h: (Np, F_in) f32. -> (Np, F_out) f32."""
    n_pad = counts_p.shape[0]
    f_out = w_self.shape[1]
    hp = jax.lax.Precision.HIGHEST

    # Hoisted tiny O(N*F^2) projections (review item #2): computed once per layer, not per
    # row tile. The streamed operand is cast to bf16 once here (review item #1).
    hw = jnp.dot(h, w_neigh, precision=hp).astype(jnp.bfloat16)
    self_term = jnp.dot(h, w_self, precision=hp) + b

    tile_m = _pick_tile(n_pad, block_m)
    tile_k = _pick_tile(n_pad, block_k)
    grid = (n_pad // tile_m, n_pad // tile_k)

    kernel = functools.partial(sage_agg_kernel, relu=relu)
    return pl.pallas_call(
        kernel,
        out_shape=jax.ShapeDtypeStruct((n_pad, f_out), jnp.float32),
        grid_spec=pltpu.PrefetchScalarGridSpec(
            num_scalar_prefetch=0,
            grid=grid,
            in_specs=[
                pl.BlockSpec((tile_m, tile_k), lambda i, k: (i, k)),   # C tile (bf16)
                pl.BlockSpec((tile_k, f_out), lambda i, k: (k, 0)),    # HW k-rows (bf16)
                pl.BlockSpec((tile_m, f_out), lambda i, k: (i, 0)),    # self term + bias (f32)
                pl.BlockSpec((tile_m, 1), lambda i, k: (i, 0)),        # 1/deg rows (f32)
            ],
            out_specs=pl.BlockSpec((tile_m, f_out), lambda i, k: (i, 0)),
        ),
        compiler_params=pltpu.CompilerParams(
            dimension_semantics=("parallel", "arbitrary")),
    )(counts_p, hw, self_term, inv_deg_p)


def edge_dot(hu_t, hv_t, *, block_e):
    """hu_t, hv_t: (F, E_pad) feature-major gathered endpoints. Returns (1, E_pad) f32."""
    f, e_pad = hu_t.shape
    te = min(block_e, e_pad)
    assert e_pad % te == 0 and te % 128 == 0, (e_pad, te)
    return pl.pallas_call(
        edge_dot_kernel,
        out_shape=jax.ShapeDtypeStruct((1, e_pad), jnp.float32),
        grid_spec=pltpu.PrefetchScalarGridSpec(
            num_scalar_prefetch=0,
            grid=(e_pad // te,),
            in_specs=[pl.BlockSpec((f, te), lambda i: (0, i)),
                      pl.BlockSpec((f, te), lambda i: (0, i))],
            out_specs=pl.BlockSpec((1, te), lambda i: (0, i)),
        ),
        compiler_params=pltpu.CompilerParams(dimension_semantics=("parallel",)),
    )(hu_t, hv_t)


def prepare_graph(src, dst, n):
    """Build dense edge-count matrix C and 1/in-degree, and pad ONCE per graph (outside jit)."""
    counts = jnp.zeros((n, n), jnp.float32).at[dst, src].add(1.0)   # C[v, u] = #edges u->v
    deg = counts.sum(axis=1, keepdims=True)
    inv_deg = 1.0 / jnp.maximum(deg, 1.0)
    n_pad = _round_up(n, 128)
    # bf16 is exact for small integer edge counts; 1/deg is applied in f32 in the kernel.
    # TODO(synk): store C as int8 on v5e/v6e (fp8-e4m3 on v7x) to halve the N^2 HBM stream.
    counts_p = jnp.zeros((n_pad, n_pad), jnp.bfloat16).at[:n, :n].set(counts.astype(jnp.bfloat16))
    inv_deg_p = jnp.zeros((n_pad, 1), jnp.float32).at[:n].set(inv_deg)
    return counts, inv_deg, counts_p, inv_deg_p


def model_forward(counts_p, inv_deg_p, x, params, src, dst, *,
                  block_m=512, block_k=2048, block_e=2048):
    """Full Model.forward: SAGE (conv1 -> ReLU -> conv2) then u_dot_v edge scores."""
    n, f_in = x.shape
    e = src.shape[0]
    n_pad = counts_p.shape[0]

    # Only the small node-feature array is padded inside jit; the N^2 pad was hoisted.
    x_p = jnp.zeros((n_pad, f_in), jnp.float32).at[:n].set(x)

    h = sage_layer(counts_p, inv_deg_p, x_p, params["w1_self"], params["w1_neigh"],
                   params["b1"], relu=True, block_m=block_m, block_k=block_k)
    h = sage_layer(counts_p, inv_deg_p, h, params["w2_self"], params["w2_neigh"],
                   params["b2"], relu=False, block_m=block_m, block_k=block_k)
    h = h[:n]

    # Edge endpoint gather, feature-major so the edge kernel emits lane-dense (1, TE) blocks.
    # The transpose is applied to the small (N, F) array (not (E, F)) before the gather.
    # TODO(synk): move the gather inside the edge kernel (scalar-prefetched src/dst in SMEM
    # + DMA row gather from h kept in pl.ANY/HBM) to avoid materializing (F, E) operands.
    f_out = h.shape[1]
    tile_e = min(block_e, _round_up(e, 128))
    e_pad = _round_up(e, tile_e)
    src_p = jnp.zeros((e_pad,), src.dtype).at[:e].set(src)
    dst_p = jnp.zeros((e_pad,), dst.dtype).at[:e].set(dst)
    h_t = h.T                                   # (F_out, N)
    hu_t = jnp.take(h_t, src_p, axis=1)         # (F_out, E_pad)
    hv_t = jnp.take(h_t, dst_p, axis=1)

    scores = edge_dot(hu_t, hv_t, block_e=tile_e)
    return scores[0, :e].reshape(e, 1)


# ------------------------------------------------------------------------- references

def model_forward_ref(counts, inv_deg, x, params, src, dst):
    """Exact f32 reference (true 1/deg adjacency, HIGHEST-precision matmuls)."""
    hp = jax.lax.Precision.HIGHEST
    a = counts * inv_deg
    h = jnp.maximum(jnp.dot(x, params["w1_self"], precision=hp)
                    + jnp.dot(jnp.dot(a, x, precision=hp), params["w1_neigh"], precision=hp)
                    + params["b1"], 0.0)
    h = (jnp.dot(h, params["w2_self"], precision=hp)
         + jnp.dot(jnp.dot(a, h, precision=hp), params["w2_neigh"], precision=hp)
         + params["b2"])
    return jnp.sum(h[src] * h[dst], axis=-1, keepdims=True)


def model_forward_quant_ref(counts, inv_deg, x, params, src, dst):
    """Reference that mirrors the kernel's quantization (bf16 C, bf16 streamed H@W_neigh)."""
    hp = jax.lax.Precision.HIGHEST
    c = counts.astype(jnp.bfloat16).astype(jnp.float32)

    def layer(h, ws, wn, b, relu):
        hw = jnp.dot(h, wn, precision=hp).astype(jnp.bfloat16).astype(jnp.float32)
        agg = jnp.dot(c, hw, precision=hp) * inv_deg
        out = jnp.dot(h, ws, precision=hp) + b + agg
        return jnp.maximum(out, 0.0) if relu else out

    h = layer(x, params["w1_self"], params["w1_neigh"], params["b1"], True)
    h = layer(h, params["w2_self"], params["w2_neigh"], params["b2"], False)
    return jnp.sum(h[src] * h[dst], axis=-1, keepdims=True)


# ------------------------------------------------------------------------------ main

if __name__ == "__main__":
    key = jax.random.PRNGKey(0)

    # small synthetic graph: N nodes, E directed edges
    N, E = 16, 48
    in_features, hidden_features, out_features = 8, 16, 8

    k_src, k_dst, k_x, k1, k2, k3, k4 = jax.random.split(key, 7)
    src = jax.random.randint(k_src, (E,), 0, N)
    dst = jax.random.randint(k_dst, (E,), 0, N)
    x = jax.random.normal(k_x, (N, in_features), jnp.float32)

    def init_w(k, fi, fo):
        return jax.random.normal(k, (fi, fo), jnp.float32) * (1.0 / jnp.sqrt(fi))

    params = {
        "w1_self": init_w(k1, in_features, hidden_features),
        "w1_neigh": init_w(k2, in_features, hidden_features),
        "b1": jnp.zeros((1, hidden_features), jnp.float32),
        "w2_self": init_w(k3, hidden_features, out_features),
        "w2_neigh": init_w(k4, hidden_features, out_features),
        "b2": jnp.zeros((1, out_features), jnp.float32),
    }

    # graph prep (count matrix, 1/deg, padded copies) once, outside the jitted forward
    counts, inv_deg, counts_p, inv_deg_p = prepare_graph(src, dst, N)

    fwd = jax.jit(model_forward)
    scores = fwd(counts_p, inv_deg_p, x, params, src, dst)
    jax.block_until_ready(scores)
    assert scores.shape == (E, 1), scores.shape

    # tight check against a reference with identical bf16 quantization of the streamed operands
    ref_q = model_forward_quant_ref(counts, inv_deg, x, params, src, dst)
    err_q = float(jnp.max(jnp.abs(scores - ref_q)))
    assert jnp.allclose(scores, ref_q, atol=2e-2, rtol=2e-2), ("quant-ref mismatch", err_q)

    # looser sanity check against the exact f32 model (bounds the bf16-stream quantization error)
    ref_x = model_forward_ref(counts, inv_deg, x, params, src, dst)
    err_x = float(jnp.max(jnp.abs(scores - ref_x)))
    assert jnp.allclose(scores, ref_x, atol=1e-1, rtol=5e-2), ("exact-ref mismatch", err_x)

    print("KERNEL_OK")
</pallas_src>

<mosaic_0001>
module attributes {stable_mosaic.version = 11 : i64} {
  func.func @sage_agg_kernel(%arg0: i32, %arg1: i32, %arg2: memref<128x128xbf16, #tpu.memory_space<vmem>>, %arg3: memref<128x16xbf16, #tpu.memory_space<vmem>>, %arg4: memref<128x16xf32, #tpu.memory_space<vmem>>, %arg5: memref<128x1xf32, #tpu.memory_space<vmem>>, %arg6: memref<128x16xf32, #tpu.memory_space<vmem>>) attributes {dimension_semantics = [#tpu.dimension_semantics<parallel>, #tpu.dimension_semantics<arbitrary>], iteration_bounds = array<i64: 1, 1>, scalar_prefetch = 0 : i64, scratch_operands = 0 : i64, tpu.core_type = #tpu.core_type<tc>, window_params = [{transform_indices = @transform_0, window_bounds = array<i64: 128, 128>}, {transform_indices = @transform_1, window_bounds = array<i64: 128, 16>}, {transform_indices = @transform_2, window_bounds = array<i64: 128, 16>}, {transform_indices = @transform_3, window_bounds = array<i64: 128, 1>}, {transform_indices = @transform_4, window_bounds = array<i64: 128, 16>}]} {
    %c0_i32 = arith.constant 0 : i32
    %0 = arith.cmpi eq, %arg1, %c0_i32 : i32
    %1 = arith.extui %0 : i1 to i32
    %c0_i32_0 = arith.constant 0 : i32
    %2 = arith.cmpi ne, %1, %c0_i32_0 : i32
    scf.if %2 {
      %cst_10 = arith.constant 0.000000e+00 : f32
      %12 = vector.broadcast %cst_10 : f32 to vector<128x16xf32>
      %c0_11 = arith.constant 0 : index
      %c0_12 = arith.constant 0 : index
      %13 = vector.load %arg6[%c0_11, %c0_12] : memref<128x16xf32, #tpu.memory_space<vmem>>, vector<128x16xf32>
      tpu.vector_store %arg6[%c0_11, %c0_12], %12 {strides = array<i32>} : memref<128x16xf32, #tpu.memory_space<vmem>>, vector<128x16xf32>,
    } else {
    }
    %c0 = arith.constant 0 : index
    %c0_1 = arith.constant 0 : index
    %3 = vector.load %arg6[%c0, %c0_1] : memref<128x16xf32, #tpu.memory_space<vmem>>, vector<128x16xf32>
    %c0_2 = arith.constant 0 : index
    %c0_3 = arith.constant 0 : index
    %4 = vector.load %arg2[%c0_2, %c0_3] : memref<128x128xbf16, #tpu.memory_space<vmem>>, vector<128x128xbf16>
    %c0_4 = arith.constant 0 : index
    %c0_5 = arith.constant 0 : index
    %5 = vector.load %arg3[%c0_4, %c0_5] : memref<128x16xbf16, #tpu.memory_space<vmem>>, vector<128x16xbf16>
    %cst = arith.constant dense<0.000000e+00> : vector<128x16xf32>
    %6 = tpu.matmul %4, %5, %cst {dimension_numbers = #tpu.dot_dimension_numbers<[1], [0], [0], [1], [0, 0, 1, 1], [], []>} : vector<128x128xbf16>, vector<128x16xbf16>, vector<128x16xf32> -> vector<128x16xf32>
    %7 = arith.addf %3, %6 : vector<128x16xf32>
    %c0_6 = arith.constant 0 : index
    %c0_7 = arith.constant 0 : index
    %8 = vector.load %arg6[%c0_6, %c0_7] : memref<128x16xf32, #tpu.memory_space<vmem>>, vector<128x16xf32>
    tpu.vector_store %arg6[%c0_6, %c0_7], %7 {strides = array<i32>} : memref<128x16xf32, #tpu.memory_space<vmem>>, vector<128x16xf32>,
    %c0_i32_8 = arith.constant 0 : i32
    %9 = arith.cmpi eq, %arg1, %c0_i32_8 : i32
    %10 = arith.extui %9 : i1 to i32
    %c0_i32_9 = arith.constant 0 : i32
    %11 = arith.cmpi ne, %10, %c0_i32_9 : i32
    scf.if %11 {
      %c0_10 = arith.constant 0 : index
      %c0_11 = arith.constant 0 : index
      %12 = vector.load %arg6[%c0_10, %c0_11] : memref<128x16xf32, #tpu.memory_space<vmem>>, vector<128x16xf32>
      %c0_12 = arith.constant 0 : index
      %c0_13 = arith.constant 0 : index
      %13 = vector.load %arg5[%c0_12, %c0_13] : memref<128x1xf32, #tpu.memory_space<vmem>>, vector<128x1xf32>
      %14 = vector.broadcast %13 : vector<128x1xf32> to vector<128x16xf32>
      %15 = arith.mulf %12, %14 : vector<128x16xf32>
      %c0_14 = arith.constant 0 : index
      %c0_15 = arith.constant 0 : index
      %16 = vector.load %arg4[%c0_14, %c0_15] : memref<128x16xf32, #tpu.memory_space<vmem>>, vector<128x16xf32>
      %17 = arith.addf %15, %16 : vector<128x16xf32>
      %cst_16 = arith.constant 0.000000e+00 : f32
      %18 = vector.broadcast %cst_16 : f32 to vector<128x16xf32>
      %19 = arith.maximumf %17, %18 : vector<128x16xf32>
      %c0_17 = arith.constant 0 : index
      %c0_18 = arith.constant 0 : index
      %20 = vector.load %arg6[%c0_17, %c0_18] : memref<128x16xf32, #tpu.memory_space<vmem>>, vector<128x16xf32>
      tpu.vector_store %arg6[%c0_17, %c0_18], %19 {strides = array<i32>} : memref<128x16xf32, #tpu.memory_space<vmem>>, vector<128x16xf32>,
    } else {
    }
    return
  }
  func.func @transform_0(%arg0: i32, %arg1: i32) -> (i32, i32) {
    %c0_i32 = arith.constant 0 : i32
    return %arg0, %arg1 : i32, i32
  }
  func.func @transform_1(%arg0: i32, %arg1: i32) -> (i32, i32) {
    %c0_i32 = arith.constant 0 : i32
    %c0_i32_0 = arith.constant 0 : i32
    return %arg1, %c0_i32 : i32, i32
  }
  func.func @transform_2(%arg0: i32, %arg1: i32) -> (i32, i32) {
    %c0_i32 = arith.constant 0 : i32
    %c0_i32_0 = arith.constant 0 : i32
    return %arg0, %c0_i32 : i32, i32
  }
  func.func @transform_3(%arg0: i32, %arg1: i32) -> (i32, i32) {
    %c0_i32 = arith.constant 0 : i32
    %c0_i32_0 = arith.constant 0 : i32
    return %arg0, %c0_i32 : i32, i32
  }
  func.func @transform_4(%arg0: i32, %arg1: i32) -> (i32, i32) {
    %c0_i32 = arith.constant 0 : i32
    %c0_i32_0 = arith.constant 0 : i32
    return %arg0, %c0_i32 : i32, i32
  }
}

module attributes {stable_mosaic.version = 11 : i64} {
  func.func @sage_agg_kernel(%arg0: i32, %arg1: i32, %arg2: memref<128x128xbf16, #tpu.memory_space<vmem>>, %arg3: memref<128x8xbf16, #tpu.memory_space<vmem>>, %arg4: memref<128x8xf32, #tpu.memory_space<vmem>>, %arg5: memref<128x1xf32, #tpu.memory_space<vmem>>, %arg6: memref<128x8xf32, #tpu.memory_space<vmem>>) attributes {dimension_semantics = [#tpu.dimension_semantics<parallel>, #tpu.dimension_semantics<arbitrary>], iteration_bounds = array<i64: 1, 1>, scalar_prefetch = 0 : i64, scratch_operands = 0 : i64, tpu.core_type = #tpu.core_type<tc>, window_params = [{transform_indices = @transform_0, window_bounds = array<i64: 128, 128>}, {transform_indices = @transform_1, window_bounds = array<i64: 128, 8>}, {transform_indices = @transform_2, window_bounds = array<i64: 128, 8>}, {transform_indices = @transform_3, window_bounds = array<i64: 128, 1>}, {transform_indices = @transform_4, window_bounds = array<i64: 128, 8>}]} {
    %c0_i32 = arith.constant 0 : i32
    %0 = arith.cmpi eq, %arg1, %c0_i32 : i32
    %1 = arith.extui %0 : i1 to i32
    %c0_i32_0 = arith.constant 0 : i32
    %2 = arith.cmpi ne, %1, %c0_i32_0 : i32
    scf.if %2 {
      %cst_10 = arith.constant 0.000000e+00 : f32
      %12 = vector.broadcast %cst_10 : f32 to vector<128x8xf32>
      %c0_11 = arith.constant 0 : index
      %c0_12 = arith.constant 0 : index
      %13 = vector.load %arg6[%c0_11, %c0_12] : memref<128x8xf32, #tpu.memory_space<vmem>>, vector<128x8xf32>
      tpu.vector_store %arg6[%c0_11, %c0_12], %12 {strides = array<i32>} : memref<128x8xf32, #tpu.memory_space<vmem>>, vector<128x8xf32>,
    } else {
    }
    %c0 = arith.constant 0 : index
    %c0_1 = arith.constant 0 : index
    %3 = vector.load %arg6[%c0, %c0_1] : memref<128x8xf32, #tpu.memory_space<vmem>>, vector<128x8xf32>
    %c0_2 = arith.constant 0 : index
    %c0_3 = arith.constant 0 : index
    %4 = vector.load %arg2[%c0_2, %c0_3] : memref<128x128xbf16, #tpu.memory_space<vmem>>, vector<128x128xbf16>
    %c0_4 = arith.constant 0 : index
    %c0_5 = arith.constant 0 : index
    %5 = vector.load %arg3[%c0_4, %c0_5] : memref<128x8xbf16, #tpu.memory_space<vmem>>, vector<128x8xbf16>
    %cst = arith.constant dense<0.000000e+00> : vector<128x8xf32>
    %6 = tpu.matmul %4, %5, %cst {dimension_numbers = #tpu.dot_dimension_numbers<[1], [0], [0], [1], [0, 0, 1, 1], [], []>} : vector<128x128xbf16>, vector<128x8xbf16>, vector<128x8xf32> -> vector<128x8xf32>
    %7 = arith.addf %3, %6 : vector<128x8xf32>
    %c0_6 = arith.constant 0 : index
    %c0_7 = arith.constant 0 : index
    %8 = vector.load %arg6[%c0_6, %c0_7] : memref<128x8xf32, #tpu.memory_space<vmem>>, vector<128x8xf32>
    tpu.vector_store %arg6[%c0_6, %c0_7], %7 {strides = array<i32>} : memref<128x8xf32, #tpu.memory_space<vmem>>, vector<128x8xf32>,
    %c0_i32_8 = arith.constant 0 : i32
    %9 = arith.cmpi eq, %arg1, %c0_i32_8 : i32
    %10 = arith.extui %9 : i1 to i32
    %c0_i32_9 = arith.constant 0 : i32
    %11 = arith.cmpi ne, %10, %c0_i32_9 : i32
    scf.if %11 {
      %c0_10 = arith.constant 0 : index
      %c0_11 = arith.constant 0 : index
      %12 = vector.load %arg6[%c0_10, %c0_11] : memref<128x8xf32, #tpu.memory_space<vmem>>, vector<128x8xf32>
      %c0_12 = arith.constant 0 : index
      %c0_13 = arith.constant 0 : index
      %13 = vector.load %arg5[%c0_12, %c0_13] : memref<128x1xf32, #tpu.memory_space<vmem>>, vector<128x1xf32>
      %14 = vector.broadcast %13 : vector<128x1xf32> to vector<128x8xf32>
      %15 = arith.mulf %12, %14 : vector<128x8xf32>
      %c0_14 = arith.constant 0 : index
      %c0_15 = arith.constant 0 : index
      %16 = vector.load %arg4[%c0_14, %c0_15] : memref<128x8xf32, #tpu.memory_space<vmem>>, vector<128x8xf32>
      %17 = arith.addf %15, %16 : vector<128x8xf32>
      %c0_16 = arith.constant 0 : index
      %c0_17 = arith.constant 0 : index
      %18 = vector.load %arg6[%c0_16, %c0_17] : memref<128x8xf32, #tpu.memory_space<vmem>>, vector<128x8xf32>
      tpu.vector_store %arg6[%c0_16, %c0_17], %17 {strides = array<i32>} : memref<128x8xf32, #tpu.memory_space<vmem>>, vector<128x8xf32>,
    } else {
    }
    return
  }
  func.func @transform_0(%arg0: i32, %arg1: i32) -> (i32, i32) {
    %c0_i32 = arith.constant 0 : i32
    return %arg0, %arg1 : i32, i32
  }
  func.func @transform_1(%arg0: i32, %arg1: i32) -> (i32, i32) {
    %c0_i32 = arith.constant 0 : i32
    %c0_i32_0 = arith.constant 0 : i32
    return %arg1, %c0_i32 : i32, i32
  }
  func.func @transform_2(%arg0: i32, %arg1: i32) -> (i32, i32) {
    %c0_i32 = arith.constant 0 : i32
    %c0_i32_0 = arith.constant 0 : i32
    return %arg0, %c0_i32 : i32, i32
  }
  func.func @transform_3(%arg0: i32, %arg1: i32) -> (i32, i32) {
    %c0_i32 = arith.constant 0 : i32
    %c0_i32_0 = arith.constant 0 : i32
    return %arg0, %c0_i32 : i32, i32
  }
  func.func @transform_4(%arg0: i32, %arg1: i32) -> (i32, i32) {
    %c0_i32 = arith.constant 0 : i32
    %c0_i32_0 = arith.constant 0 : i32
    return %arg0, %c0_i32 : i32, i32
  }
}

module attributes {stable_mosaic.version = 11 : i64} {
  func.func @edge_dot_kernel(%arg0: i32, %arg1: memref<8x128xf32, #tpu.memory_space<vmem>>, %arg2: memref<8x128xf32, #tpu.memory_space<vmem>>, %arg3: memref<1x128xf32, #tpu.memory_space<vmem>>) attributes {dimension_semantics = [#tpu.dimension_semantics<parallel>], iteration_bounds = array<i64: 1>, scalar_prefetch = 0 : i64, scratch_operands = 0 : i64, tpu.core_type = #tpu.core_type<tc>, window_params = [{transform_indices = @transform_0, window_bounds = array<i64: 8, 128>}, {transform_indices = @transform_1, window_bounds = array<i64: 8, 128>}, {transform_indices = @transform_2, window_bounds = array<i64: 1, 128>}]} {
    %c0 = arith.constant 0 : index
    %c0_0 = arith.constant 0 : index
    %0 = vector.load %arg1[%c0, %c0_0] : memref<8x128xf32, #tpu.memory_space<vmem>>, vector<8x128xf32>
    %c0_1 = arith.constant 0 : index
    %c0_2 = arith.constant 0 : index
    %1 = vector.load %arg2[%c0_1, %c0_2] : memref<8x128xf32, #tpu.memory_space<vmem>>, vector<8x128xf32>
    %2 = arith.mulf %0, %1 : vector<8x128xf32>
    %cst = arith.constant dense<0.000000e+00> : vector<128xf32>
    %3 = vector.multi_reduction <add>, %2, %cst [0] : vector<8x128xf32> to vector<128xf32>
    %4 = vector.shape_cast %3 : vector<128xf32> to vector<1x128xf32>
    %c0_3 = arith.constant 0 : index
    %c0_4 = arith.constant 0 : index
    %5 = vector.load %arg3[%c0_3, %c0_4] : memref<1x128xf32, #tpu.memory_space<vmem>>, vector<1x128xf32>
    tpu.vector_store %arg3[%c0_3, %c0_4], %4 {strides = array<i32>} : memref<1x128xf32, #tpu.memory_space<vmem>>, vector<1x128xf32>,
    return
  }
  func.func @transform_0(%arg0: i32) -> (i32, i32) {
    %c0_i32 = arith.constant 0 : i32
    %c0_i32_0 = arith.constant 0 : i32
    return %c0_i32, %arg0 : i32, i32
  }
  func.func @transform_1(%arg0: i32) -> (i32, i32) {
    %c0_i32 = arith.constant 0 : i32
    %c0_i32_0 = arith.constant 0 : i32
    return %c0_i32, %arg0 : i32, i32
  }
  func.func @transform_2(%arg0: i32) -> (i32, i32) {
    %c0_i32 = arith.constant 0 : i32
    %c0_i32_0 = arith.constant 0 : i32
    return %c0_i32, %arg0 : i32, i32
  }
}

</mosaic_0001>

<bundles_post_ra>
// kernel: model_forward.4
= control target key start
LH: loop header
LB: loop body
LE: loop exit
PB: predicated region body
PF: predicated region fallthrough
CT: control target
= control target key end

     0   :  { %v556_v1 = vmov 0   ;;  %vm21_vm0 = vcmask 64512   ;;  %v557_v33 = vmov 0.0   ;;  %s1042_s1 = inlined_call_operand.vmem [shape: bf16[128,8], index: 1, kind: input, shape index: {}]   ;;  %s1043_s3 = inlined_call_operand.vmem [shape: f32[128,1], index: 3, kind: input, shape index: {}]   ;;  %s1044_s0 = inlined_call_operand.vmem [shape: bf16[128,128], index: 0, kind: input, shape index: {}]   ;;  %s1045_s4 = inlined_call_operand.vmem [shape: f32[128,8], index: 4, kind: output, shape index: {}]   ;;  %s1046_s2 = inlined_call_operand.vmem [shape: f32[128,8], index: 2, kind: input, shape index: {}]  }
   0x1   :  { %v526_v0 = vld [vmem:[%s1042_s1 + $0x38] sm:$0xff]  ;;  %553 = vset.pattern.permute.xlu0 %v556_v1  ;;  %v283_v2 = vld [vmem:[%s1043_s3] sm:$0xff]  ;;  %554 = vset.pattern.permute.xlu1 %v556_v1  ;;  %v525_v3 = vld [vmem:[%s1042_s1 + $0x30] sm:$0xff]  ;;  %22 = vst.msk [vmem:[%s1045_s4] sm:$0xff] %vm21_vm0, %v557_v33 }
   0x2   :  { %301 = vperm.xlu0 %553, %v283_v2   ;;  %555 = vset.pattern.permute.xlu2 %v556_v1  ;;  %v285_v4 = vld [vmem:[%s1043_s3 + $0x10] sm:$0xff]  ;;  %v524_v5 = vld [vmem:[%s1042_s1 + $0x28] sm:$0xff]  ;;  %v287_v7 = vld [vmem:[%s1043_s3 + $0x20] sm:$0xff]  ;;  %23 = vst.msk [vmem:[%s1045_s4 + $0x8] sm:$0xff] %vm21_vm0, %v557_v33 }
   0x3   :  { %182 = vmatpush.bf16.msra.mxu0 %v526_v0  ;;  %527 = vmatpush.bf16.msra.mxu1 %v526_v0  ;;  %v284_v6 = vld [vmem:[%s1043_s3 + $0x8] sm:$0xff]  ;;  %v286_v8 = vld [vmem:[%s1043_s3 + $0x18] sm:$0xff]  ;;  %v523_v9 = vld [vmem:[%s1042_s1 + $0x20] sm:$0xff]  ;;  %24 = vst.msk [vmem:[%s1045_s4 + $0x10] sm:$0xff] %vm21_vm0, %v557_v33 }
   0x4   :  { %528 = vmatpush.bf16.msra.mxu2 %v526_v0  ;;  %529 = vmatpush.bf16.msra.mxu3 %v526_v0  ;;  %v522_v10 = vld [vmem:[%s1042_s1 + $0x18] sm:$0xff]  ;;  %v289_v11 = vld [vmem:[%s1043_s3 + $0x30] sm:$0xff]  ;;  %v288_v14 = vld [vmem:[%s1043_s3 + $0x28] sm:$0xff]  ;;  %25 = vst.msk [vmem:[%s1045_s4 + $0x18] sm:$0xff] %vm21_vm0, %v557_v33 }
   0x5   :  { %311 = vperm.xlu1 %554, %v285_v4   ;;  %321 = vperm.xlu2 %555, %v287_v7   ;;  %v290_v12 = vld [vmem:[%s1043_s3 + $0x38] sm:$0xff]  ;;  %v521_v13 = vld [vmem:[%s1042_s1 + $0x10] sm:$0xff]  ;;  %v520_v15 = vld [vmem:[%s1042_s1 + $0x8] sm:$0xff]  ;;  %26 = vst.msk [vmem:[%s1045_s4 + $0x20] sm:$0xff] %vm21_vm0, %v557_v33 }
   0x6   :  { %v292_v16 = vld [vmem:[%s1043_s3 + $0x48] sm:$0xff]  ;;  %v293_v17 = vld [vmem:[%s1043_s3 + $0x50] sm:$0xff]  ;;  %v291_v18 = vld [vmem:[%s1043_s3 + $0x40] sm:$0xff]  ;;  %27 = vst.msk [vmem:[%s1045_s4 + $0x28] sm:$0xff] %vm21_vm0, %v557_v33 }
   0x7   :  { %183 = vmatpush.bf16.msra.mxu0 %v525_v3  ;;  %530 = vmatpush.bf16.msra.mxu1 %v525_v3  ;;  %v519_v19 = vld [vmem:[%s1042_s1] sm:$0xff]  ;;  %v513_v21 = vld [vmem:[%s1044_s0 + $0x10] sm:$0xff]  ;;  %v296_v25 = vld [vmem:[%s1043_s3 + $0x68] sm:$0xff]  ;;  %28 = vst.msk [vmem:[%s1045_s4 + $0x30] sm:$0xff] %vm21_vm0, %v557_v33 }
   0x8   :  { %531 = vmatpush.bf16.msra.mxu2 %v525_v3  ;;  %532 = vmatpush.bf16.msra.mxu3 %v525_v3  ;;  %v511_v20 = vld [vmem:[%s1044_s0] sm:$0xff]  ;;  %v517_v23 = vld [vmem:[%s1044_s0 + $0x30] sm:$0xff]  ;;  %v294_v26 = vld [vmem:[%s1043_s3 + $0x58] sm:$0xff]  ;;  %29 = vst.msk [vmem:[%s1045_s4 + $0x38] sm:$0xff] %vm21_vm0, %v557_v33 }
   0x9   :  { %v515_v22 = vld [vmem:[%s1044_s0 + $0x20] sm:$0xff]  ;;  %v298_v27 = vld [vmem:[%s1043_s3 + $0x78] sm:$0xff]  ;;  %v297_v28 = vld [vmem:[%s1043_s3 + $0x70] sm:$0xff]  ;;  %30 = vst.msk [vmem:[%s1045_s4 + $0x40] sm:$0xff] %vm21_vm0, %v557_v33 }
   0xa   :  { %306 = vperm.xlu0 %553, %v284_v6   ;;  %v295_v24 = vld [vmem:[%s1043_s3 + $0x60] sm:$0xff]  ;;  %v512_v29 = vld [vmem:[%s1044_s0 + $0x8] sm:$0xff]  ;;  %v514_v30 = vld [vmem:[%s1044_s0 + $0x18] sm:$0xff]  ;;  %31 = vst.msk [vmem:[%s1045_s4 + $0x48] sm:$0xff] %vm21_vm0, %v557_v33 }
   0xb   :  { %184 = vmatpush.bf16.msra.mxu0 %v524_v5  ;;  %533 = vmatpush.bf16.msra.mxu1 %v524_v5  ;;  %v516_v31 = vld [vmem:[%s1044_s0 + $0x28] sm:$0xff]  ;;  %v518_v32 = vld [vmem:[%s1044_s0 + $0x38] sm:$0xff]  ;;  %32 = vst.msk [vmem:[%s1045_s4 + $0x50] sm:$0xff] %vm21_vm0, %v557_v33  ;;  %v38_v40 = vld [vmem:[%s1045_s4] sm:$0xff] }
   0xc   :  { %534 = vmatpush.bf16.msra.mxu2 %v524_v5  ;;  %535 = vmatpush.bf16.msra.mxu3 %v524_v5  ;;  %33 = vst.msk [vmem:[%s1045_s4 + $0x58] sm:$0xff] %vm21_vm0, %v557_v33  ;;  %v42_v41 = vld [vmem:[%s1045_s4 + $0x20] sm:$0xff]  ;;  %v39_v51 = vld [vmem:[%s1045_s4 + $0x8] sm:$0xff] }
   0xd   :  { %316 = vperm.xlu1 %554, %v286_v8   ;;  %326 = vperm.xlu2 %555, %v288_v14   ;;  %34 = vst.msk [vmem:[%s1045_s4 + $0x60] sm:$0xff] %vm21_vm0, %v557_v33  ;;  %v43_v52 = vld [vmem:[%s1045_s4 + $0x28] sm:$0xff]  ;;  %v395_v62 = vld [vmem:[%s1046_s2] sm:$0xff] }
   0xe   :  { %35 = vst.msk [vmem:[%s1045_s4 + $0x68] sm:$0xff] %vm21_vm0, %v557_v33  ;;  %v399_v1 = vld [vmem:[%s1046_s2 + $0x20] sm:$0xff] }
   0xf   :  { %185 = vmatpush.bf16.msra.mxu0 %v523_v9  ;;  %536 = vmatpush.bf16.msra.mxu1 %v523_v9  ;;  %36 = vst.msk [vmem:[%s1045_s4 + $0x70] sm:$0xff] %vm21_vm0, %v557_v33 }
  0x10   :  { %537 = vmatpush.bf16.msra.mxu2 %v523_v9  ;;  %538 = vmatpush.bf16.msra.mxu3 %v523_v9  ;;  %37 = vst.msk [vmem:[%s1045_s4 + $0x78] sm:$0xff] %vm21_vm0, %v557_v33  ;;  %v46_v48 = vld [vmem:[%s1045_s4 + $0x40] sm:$0xff]  ;;  %v40_v9 = vld [vmem:[%s1045_s4 + $0x10] sm:$0xff] }
  0x11   :  { %v47_v5 = vld [vmem:[%s1045_s4 + $0x48] sm:$0xff] }
  0x12   :  { %331 = vperm.xlu0 %553, %v289_v11  }
  0x13   :  { %186 = vmatpush.bf16.msra.mxu0 %v522_v10  ;;  %539 = vmatpush.bf16.msra.mxu1 %v522_v10 }
  0x14   :  { %540 = vmatpush.bf16.msra.mxu2 %v522_v10  ;;  %541 = vmatpush.bf16.msra.mxu3 %v522_v10  ;;  %v50_v49 = vld [vmem:[%s1045_s4 + $0x60] sm:$0xff]  ;;  %v44_v10 = vld [vmem:[%s1045_s4 + $0x30] sm:$0xff] }
  0x15   :  { %336 = vperm.xlu1 %554, %v290_v12   ;;  %341 = vperm.xlu2 %555, %v291_v18   ;;  %v51_v6 = vld [vmem:[%s1045_s4 + $0x68] sm:$0xff]  ;;  %v403_v18 = vld [vmem:[%s1046_s2 + $0x40] sm:$0xff] }
  0x17   :  { %187 = vmatpush.bf16.msra.mxu0 %v521_v13  ;;  %542 = vmatpush.bf16.msra.mxu1 %v521_v13 }
  0x18   :  { %543 = vmatpush.bf16.msra.mxu2 %v521_v13  ;;  %544 = vmatpush.bf16.msra.mxu3 %v521_v13 }
  0x1a   :  { %346 = vperm.xlu0 %553, %v292_v16  }
  0x1b   :  { %188 = vmatpush.bf16.msra.mxu0 %v520_v15  ;;  %545 = vmatpush.bf16.msra.mxu1 %v520_v15 }
  0x1c   :  { %546 = vmatpush.bf16.msra.mxu2 %v520_v15  ;;  %547 = vmatpush.bf16.msra.mxu3 %v520_v15 }
  0x1d   :  { %351 = vperm.xlu1 %554, %v293_v17   ;;  %356 = vperm.xlu2 %555, %v294_v26  }
  0x1f   :  { %189 = vmatpush.bf16.msra.mxu0 %v519_v19  ;;  %548 = vmatpush.bf16.msra.mxu1 %v519_v19 }
  0x20   :  { %549 = vmatpush.bf16.msra.mxu2 %v519_v19  ;;  %550 = vmatpush.bf16.msra.mxu3 %v519_v19 }
  0x22   :  { %190 = vmatmul.bf16.vlgmr.msra.gmra.mxu0 %v511_v20  ;;  %200 = vmatmul.bf16.vlgmr.msra.gmra.mxu1 %v513_v21 }
  0x23   :  { %210 = vmatmul.bf16.vlgmr.msra.gmra.mxu2 %v515_v22  ;;  %220 = vmatmul.bf16.vlgmr.msra.gmra.mxu3 %v517_v23 }
  0x24   :  { %361 = vperm.xlu0 %553, %v295_v24   ;;  %v407_v24 = vld [vmem:[%s1046_s2 + $0x60] sm:$0xff] }
  0x25   :  { %366 = vperm.xlu1 %554, %v296_v25   ;;  %371 = vperm.xlu2 %555, %v297_v28  }
  0x2c   :  { %376 = vperm.xlu0 %553, %v298_v27   ;;  %v396_v27 = vld [vmem:[%s1046_s2 + $0x8] sm:$0xff] }
  0x32   :  { %195 = vmatmul.bf16.gmra.mxu0 %v512_v29  ;;  %205 = vmatmul.bf16.gmra.mxu1 %v514_v30 }
  0x33   :  { %215 = vmatmul.bf16.gmra.mxu2 %v516_v31  ;;  %225 = vmatmul.bf16.gmra.mxu3 %v518_v32  ;;  %v400_v31 = vld [vmem:[%s1046_s2 + $0x28] sm:$0xff] }
  0x5f   :  { %v322_v37 = vpop.permute.xlu2 %321 }
  0x67   :  { %v757_v46 = vpop.permute.xlu2 %326 }
  0x6f   :  { %v342_v2 = vpop.permute.xlu2 %341 }
  0x74   :  { %v302_v34 = vpop.permute.xlu0 %301 }
  0x77   :  { %v743_v35 = vpop.permute.xlu1 %311 }
  0x7c   :  { %v745_v36 = vpop.permute.xlu0 %306 }
  0x7f   :  { %v747_v38 = vpop.permute.xlu1 %316 }
  0x84   :  { %v749_v39 = vpop.permute.xlu0 %331 }
  0x87   :  { %v763_v47 = vpop.permute.xlu1 %336 }
  0x8c   :  { %v775_v50 = vpop.permute.xlu0 %346 }
  0x8f   :  { %v817_v7 = vpop.permute.xlu1 %351 }
  0x96   :  { %v362_v21 = vpop.permute.xlu0 %361 }
  0x9f   :  { %v191_v42 = vpop.f32.mrf.mxu0  ;;  %v201_v43 = vpop.f32.mrf.mxu1 }
  0xa0   :  { %v231_v44 = vadd.f32 %v191_v42, %v38_v40  ;;  %v235_v45 = vadd.f32 %v201_v43, %v42_v41  ;;  %v41_v41 = vld [vmem:[%s1045_s4 + $0x18] sm:$0xff] }
  0xa1   :  { %v45_v42 = vld [vmem:[%s1045_s4 + $0x38] sm:$0xff] }
  0xa2   :  { %248 = vst.msk [vmem:[%s1045_s4] sm:$0xff] %vm21_vm0, %v231_v44 }
  0xa3   :  { %252 = vst.msk [vmem:[%s1045_s4 + $0x20] sm:$0xff] %vm21_vm0, %v235_v45 }
  0xa6   :  { %v211_v53 = vpop.f32.mrf.mxu2  ;;  %v221_v54 = vpop.f32.mrf.mxu3 }
  0xa7   :  { %v239_v55 = vadd.f32 %v211_v53, %v46_v48  ;;  %v243_v56 = vadd.f32 %v221_v54, %v50_v49  ;;  %v193_v57 = vpop.f32.mrf.mxu0  ;;  %v203_v58 = vpop.f32.mrf.mxu1  ;;  %v404_v53 = vld [vmem:[%s1046_s2 + $0x48] sm:$0xff] }
  0xa8   :  { %v232_v59 = vadd.f32 %v193_v57, %v39_v51  ;;  %v236_v60 = vadd.f32 %v203_v58, %v43_v52 }
  0xa9   :  { %v267_v61 = vld [vmem:[%s1045_s4] sm:$0xff]  ;;  %256 = vst.msk [vmem:[%s1045_s4 + $0x40] sm:$0xff] %vm21_vm0, %v239_v55 }
  0xaa   :  { %v379_v63 = vmul.f32 %v302_v34, %v267_v61  ;;  %v271_v0 = vld [vmem:[%s1045_s4 + $0x20] sm:$0xff]  ;;  %260 = vst.msk [vmem:[%s1045_s4 + $0x60] sm:$0xff] %vm21_vm0, %v243_v56  ;;  %v48_v34 = vld [vmem:[%s1045_s4 + $0x50] sm:$0xff]  ;;  %v367_v56 = vpop.permute.xlu1 %366 }
  0xab   :  { %v383_v3 = vmul.f32 %v322_v37, %v271_v0  ;;  %249 = vst.msk [vmem:[%s1045_s4 + $0x8] sm:$0xff] %vm21_vm0, %v232_v59  ;;  %v881_v37 = vpop.permute.xlu2 %356  ;;  %v408_v59 = vld [vmem:[%s1046_s2 + $0x68] sm:$0xff] }
  0xac   :  { %v411_v4 = vadd.f32 %v395_v62, %v379_v63  ;;  %253 = vst.msk [vmem:[%s1045_s4 + $0x28] sm:$0xff] %vm21_vm0, %v236_v60 }
  0xad   :  { %v415_v8 = vadd.f32 %v399_v1, %v383_v3  ;;  %v401_v1 = vld [vmem:[%s1046_s2 + $0x30] sm:$0xff] }
  0xae   :  { %427 = vst.msk [vmem:[%s1045_s4] sm:$0xff] %vm21_vm0, %v411_v4  ;;  %v213_v11 = vpop.f32.mrf.mxu2  ;;  %v223_v12 = vpop.f32.mrf.mxu3  ;;  %v53_v4 = vld [vmem:[%s1045_s4 + $0x78] sm:$0xff] }
  0xaf   :  { %431 = vst.msk [vmem:[%s1045_s4 + $0x20] sm:$0xff] %vm21_vm0, %v415_v8  ;;  %v240_v13 = vadd.f32 %v213_v11, %v47_v5  ;;  %v244_v14 = vadd.f32 %v223_v12, %v51_v6  ;;  %v196_v15 = vpop.f32.mrf.mxu0  ;;  %v206_v16 = vpop.f32.mrf.mxu1  ;;  %v405_v12 = vld [vmem:[%s1046_s2 + $0x50] sm:$0xff] }
  0xb0   :  { %v275_v17 = vld [vmem:[%s1045_s4 + $0x40] sm:$0xff]  ;;  %v233_v19 = vadd.f32 %v196_v15, %v40_v9  ;;  %v237_v20 = vadd.f32 %v206_v16, %v44_v10  ;;  %v409_v16 = vld [vmem:[%s1046_s2 + $0x70] sm:$0xff] }
  0xb1   :  { %v387_v22 = vmul.f32 %v342_v2, %v275_v17  ;;  %v279_v23 = vld [vmem:[%s1045_s4 + $0x60] sm:$0xff]  ;;  %257 = vst.msk [vmem:[%s1045_s4 + $0x48] sm:$0xff] %vm21_vm0, %v240_v13 }
  0xb2   :  { %v391_v25 = vmul.f32 %v362_v21, %v279_v23  ;;  %v268_v26 = vld [vmem:[%s1045_s4 + $0x8] sm:$0xff]  ;;  %261 = vst.msk [vmem:[%s1045_s4 + $0x68] sm:$0xff] %vm21_vm0, %v244_v14 }
  0xb3   :  { %v419_v28 = vadd.f32 %v403_v18, %v387_v22  ;;  %v380_v29 = vmul.f32 %v745_v36, %v268_v26  ;;  %v272_v30 = vld [vmem:[%s1045_s4 + $0x28] sm:$0xff]  ;;  %250 = vst.msk [vmem:[%s1045_s4 + $0x10] sm:$0xff] %vm21_vm0, %v233_v19  ;;  %v52_v36 = vld [vmem:[%s1045_s4 + $0x70] sm:$0xff]  ;;  %v372_v13 = vpop.permute.xlu2 %371  ;;  %v402_v22 = vld [vmem:[%s1046_s2 + $0x38] sm:$0xff] }
  0xb4   :  { %v423_v32 = vadd.f32 %v407_v24, %v391_v25  ;;  %v384_v33 = vmul.f32 %v757_v46, %v272_v30  ;;  %254 = vst.msk [vmem:[%s1045_s4 + $0x30] sm:$0xff] %vm21_vm0, %v237_v20  ;;  %v406_v26 = vld [vmem:[%s1046_s2 + $0x58] sm:$0xff] }
  0xb5   :  { %435 = vst.msk [vmem:[%s1045_s4 + $0x40] sm:$0xff] %vm21_vm0, %v419_v28  ;;  %v412_v40 = vadd.f32 %v396_v27, %v380_v29  ;;  %v377_v27 = vpop.permute.xlu0 %376  ;;  %v410_v30 = vld [vmem:[%s1046_s2 + $0x78] sm:$0xff] }
  0xb6   :  { %439 = vst.msk [vmem:[%s1045_s4 + $0x60] sm:$0xff] %vm21_vm0, %v423_v32  ;;  %v416_v43 = vadd.f32 %v400_v31, %v384_v33  ;;  %v216_v44 = vpop.f32.mrf.mxu2  ;;  %v226_v45 = vpop.f32.mrf.mxu3 }
  0xb7   :  { %428 = vst.msk [vmem:[%s1045_s4 + $0x8] sm:$0xff] %vm21_vm0, %v412_v40  ;;  %v241_v46 = vadd.f32 %v216_v44, %v48_v34  ;;  %v245_v48 = vadd.f32 %v226_v45, %v52_v36  ;;  %v198_v49 = vpop.f32.mrf.mxu0  ;;  %v208_v51 = vpop.f32.mrf.mxu1 }
  0xb8   :  { %432 = vst.msk [vmem:[%s1045_s4 + $0x28] sm:$0xff] %vm21_vm0, %v416_v43  ;;  %v276_v52 = vld [vmem:[%s1045_s4 + $0x48] sm:$0xff]  ;;  %v234_v54 = vadd.f32 %v198_v49, %v41_v41  ;;  %v238_v55 = vadd.f32 %v208_v51, %v45_v42 }
  0xb9   :  { %v388_v57 = vmul.f32 %v775_v50, %v276_v52  ;;  %v280_v58 = vld [vmem:[%s1045_s4 + $0x68] sm:$0xff]  ;;  %258 = vst.msk [vmem:[%s1045_s4 + $0x50] sm:$0xff] %vm21_vm0, %v241_v46  ;;  %v397_v50 = vld [vmem:[%s1046_s2 + $0x10] sm:$0xff] }
  0xba   :  { %v392_v60 = vmul.f32 %v367_v56, %v280_v58  ;;  %v269_v61 = vld [vmem:[%s1045_s4 + $0x10] sm:$0xff]  ;;  %262 = vst.msk [vmem:[%s1045_s4 + $0x70] sm:$0xff] %vm21_vm0, %v245_v48 }
  0xbb   :  { %v420_v62 = vadd.f32 %v404_v53, %v388_v57  ;;  %v381_v63 = vmul.f32 %v743_v35, %v269_v61  ;;  %v273_v0 = vld [vmem:[%s1045_s4 + $0x30] sm:$0xff]  ;;  %251 = vst.msk [vmem:[%s1045_s4 + $0x18] sm:$0xff] %vm21_vm0, %v234_v54  ;;  %v49_v35 = vld [vmem:[%s1045_s4 + $0x58] sm:$0xff] }
  0xbc   :  { %v424_v2 = vadd.f32 %v408_v59, %v392_v60  ;;  %v385_v3 = vmul.f32 %v749_v39, %v273_v0  ;;  %255 = vst.msk [vmem:[%s1045_s4 + $0x38] sm:$0xff] %vm21_vm0, %v238_v55 }
  0xbd   :  { %436 = vst.msk [vmem:[%s1045_s4 + $0x48] sm:$0xff] %vm21_vm0, %v420_v62  ;;  %v413_v5 = vadd.f32 %v397_v50, %v381_v63 }
  0xbe   :  { %440 = vst.msk [vmem:[%s1045_s4 + $0x68] sm:$0xff] %vm21_vm0, %v424_v2  ;;  %v417_v39 = vadd.f32 %v401_v1, %v385_v3  ;;  %v218_v6 = vpop.f32.mrf.mxu2  ;;  %v228_v8 = vpop.f32.mrf.mxu3 }
  0xbf   :  { %429 = vst.msk [vmem:[%s1045_s4 + $0x10] sm:$0xff] %vm21_vm0, %v413_v5  ;;  %v242_v9 = vadd.f32 %v218_v6, %v49_v35  ;;  %v246_v10 = vadd.f32 %v228_v8, %v53_v4 }
  0xc0   :  { %433 = vst.msk [vmem:[%s1045_s4 + $0x30] sm:$0xff] %vm21_vm0, %v417_v39  ;;  %v277_v11 = vld [vmem:[%s1045_s4 + $0x50] sm:$0xff] }
  0xc1   :  { %v389_v14 = vmul.f32 %v817_v7, %v277_v11  ;;  %v281_v15 = vld [vmem:[%s1045_s4 + $0x70] sm:$0xff]  ;;  %259 = vst.msk [vmem:[%s1045_s4 + $0x58] sm:$0xff] %vm21_vm0, %v242_v9  ;;  %v398_v7 = vld [vmem:[%s1046_s2 + $0x18] sm:$0xff] }
  0xc2   :  { %v393_v17 = vmul.f32 %v372_v13, %v281_v15  ;;  %v270_v18 = vld [vmem:[%s1045_s4 + $0x18] sm:$0xff]  ;;  %263 = vst.msk [vmem:[%s1045_s4 + $0x78] sm:$0xff] %vm21_vm0, %v246_v10 }
  0xc3   :  { %v421_v19 = vadd.f32 %v405_v12, %v389_v14  ;;  %v382_v20 = vmul.f32 %v747_v38, %v270_v18  ;;  %v274_v21 = vld [vmem:[%s1045_s4 + $0x38] sm:$0xff] }
  0xc4   :  { %v425_v23 = vadd.f32 %v409_v16, %v393_v17  ;;  %v386_v24 = vmul.f32 %v763_v47, %v274_v21 }
  0xc5   :  { %437 = vst.msk [vmem:[%s1045_s4 + $0x50] sm:$0xff] %vm21_vm0, %v421_v19  ;;  %v414_v25 = vadd.f32 %v398_v7, %v382_v20 }
  0xc6   :  { %441 = vst.msk [vmem:[%s1045_s4 + $0x70] sm:$0xff] %vm21_vm0, %v425_v23  ;;  %v418_v38 = vadd.f32 %v402_v22, %v386_v24 }
  0xc7   :  { %430 = vst.msk [vmem:[%s1045_s4 + $0x18] sm:$0xff] %vm21_vm0, %v414_v25 }
  0xc8   :  { %434 = vst.msk [vmem:[%s1045_s4 + $0x38] sm:$0xff] %vm21_vm0, %v418_v38  ;;  %v278_v47 = vld [vmem:[%s1045_s4 + $0x58] sm:$0xff] }
  0xc9   :  { %v390_v28 = vmul.f32 %v881_v37, %v278_v47  ;;  %v282_v29 = vld [vmem:[%s1045_s4 + $0x78] sm:$0xff] }
  0xca   :  { %v394_v31 = vmul.f32 %v377_v27, %v282_v29 }
  0xcb   :  { %v422_v32 = vadd.f32 %v406_v26, %v390_v28 }
  0xcc   :  { %v426_v33 = vadd.f32 %v410_v30, %v394_v31 }
  0xcd   :  { %438 = vst.msk [vmem:[%s1045_s4 + $0x58] sm:$0xff] %vm21_vm0, %v422_v32 }
  0xce   :  { %442 = vst.msk [vmem:[%s1045_s4 + $0x78] sm:$0xff] %vm21_vm0, %v426_v33 }

// kernel: model_forward.3
= control target key start
LH: loop header
LB: loop body
LE: loop exit
PB: predicated region body
PF: predicated region fallthrough
CT: control target
= control target key end

     0   :  { %v572_v1 = vmov 0   ;;  %vm21_vm0 = vcmask 130048   ;;  %v573_v33 = vmov 0.0   ;;  %s1058_s1 = inlined_call_operand.vmem [shape: bf16[128,16], index: 1, kind: input, shape index: {}]   ;;  %s1059_s3 = inlined_call_operand.vmem [shape: f32[128,1], index: 3, kind: input, shape index: {}]   ;;  %s1060_s0 = inlined_call_operand.vmem [shape: bf16[128,128], index: 0, kind: input, shape index: {}]   ;;  %s1061_s4 = inlined_call_operand.vmem [shape: f32[128,16], index: 4, kind: output, shape index: {}]   ;;  %s1062_s2 = inlined_call_operand.vmem [shape: f32[128,16], index: 2, kind: input, shape index: {}]  }
   0x1   :  { %v542_v0 = vld [vmem:[%s1058_s1 + $0x38] sm:$0xff]  ;;  %569 = vset.pattern.permute.xlu0 %v572_v1  ;;  %v283_v2 = vld [vmem:[%s1059_s3] sm:$0xff]  ;;  %570 = vset.pattern.permute.xlu1 %v572_v1  ;;  %v541_v3 = vld [vmem:[%s1058_s1 + $0x30] sm:$0xff]  ;;  %22 = vst.msk [vmem:[%s1061_s4] sm:$0xff] %vm21_vm0, %v573_v33 }
   0x2   :  { %301 = vperm.xlu0 %569, %v283_v2   ;;  %571 = vset.pattern.permute.xlu2 %v572_v1  ;;  %v285_v4 = vld [vmem:[%s1059_s3 + $0x10] sm:$0xff]  ;;  %v540_v5 = vld [vmem:[%s1058_s1 + $0x28] sm:$0xff]  ;;  %v287_v7 = vld [vmem:[%s1059_s3 + $0x20] sm:$0xff]  ;;  %23 = vst.msk [vmem:[%s1061_s4 + $0x8] sm:$0xff] %vm21_vm0, %v573_v33 }
   0x3   :  { %182 = vmatpush.bf16.msra.mxu0 %v542_v0  ;;  %543 = vmatpush.bf16.msra.mxu1 %v542_v0  ;;  %v284_v6 = vld [vmem:[%s1059_s3 + $0x8] sm:$0xff]  ;;  %v286_v8 = vld [vmem:[%s1059_s3 + $0x18] sm:$0xff]  ;;  %v539_v9 = vld [vmem:[%s1058_s1 + $0x20] sm:$0xff]  ;;  %24 = vst.msk [vmem:[%s1061_s4 + $0x10] sm:$0xff] %vm21_vm0, %v573_v33 }
   0x4   :  { %544 = vmatpush.bf16.msra.mxu2 %v542_v0  ;;  %545 = vmatpush.bf16.msra.mxu3 %v542_v0  ;;  %v538_v10 = vld [vmem:[%s1058_s1 + $0x18] sm:$0xff]  ;;  %v289_v11 = vld [vmem:[%s1059_s3 + $0x30] sm:$0xff]  ;;  %v288_v14 = vld [vmem:[%s1059_s3 + $0x28] sm:$0xff]  ;;  %25 = vst.msk [vmem:[%s1061_s4 + $0x18] sm:$0xff] %vm21_vm0, %v573_v33 }
   0x5   :  { %311 = vperm.xlu1 %570, %v285_v4   ;;  %321 = vperm.xlu2 %571, %v287_v7   ;;  %v290_v12 = vld [vmem:[%s1059_s3 + $0x38] sm:$0xff]  ;;  %v537_v13 = vld [vmem:[%s1058_s1 + $0x10] sm:$0xff]  ;;  %v536_v15 = vld [vmem:[%s1058_s1 + $0x8] sm:$0xff]  ;;  %26 = vst.msk [vmem:[%s1061_s4 + $0x20] sm:$0xff] %vm21_vm0, %v573_v33 }
   0x6   :  { %v292_v16 = vld [vmem:[%s1059_s3 + $0x48] sm:$0xff]  ;;  %v293_v17 = vld [vmem:[%s1059_s3 + $0x50] sm:$0xff]  ;;  %v291_v18 = vld [vmem:[%s1059_s3 + $0x40] sm:$0xff]  ;;  %27 = vst.msk [vmem:[%s1061_s4 + $0x28] sm:$0xff] %vm21_vm0, %v573_v33 }
   0x7   :  { %183 = vmatpush.bf16.msra.mxu0 %v541_v3  ;;  %546 = vmatpush.bf16.msra.mxu1 %v541_v3  ;;  %v535_v19 = vld [vmem:[%s1058_s1] sm:$0xff]  ;;  %v529_v21 = vld [vmem:[%s1060_s0 + $0x10] sm:$0xff]  ;;  %v296_v25 = vld [vmem:[%s1059_s3 + $0x68] sm:$0xff]  ;;  %28 = vst.msk [vmem:[%s1061_s4 + $0x30] sm:$0xff] %vm21_vm0, %v573_v33 }
   0x8   :  { %547 = vmatpush.bf16.msra.mxu2 %v541_v3  ;;  %548 = vmatpush.bf16.msra.mxu3 %v541_v3  ;;  %v527_v20 = vld [vmem:[%s1060_s0] sm:$0xff]  ;;  %v533_v23 = vld [vmem:[%s1060_s0 + $0x30] sm:$0xff]  ;;  %v294_v26 = vld [vmem:[%s1059_s3 + $0x58] sm:$0xff]  ;;  %29 = vst.msk [vmem:[%s1061_s4 + $0x38] sm:$0xff] %vm21_vm0, %v573_v33 }
   0x9   :  { %v531_v22 = vld [vmem:[%s1060_s0 + $0x20] sm:$0xff]  ;;  %v298_v27 = vld [vmem:[%s1059_s3 + $0x78] sm:$0xff]  ;;  %v297_v28 = vld [vmem:[%s1059_s3 + $0x70] sm:$0xff]  ;;  %30 = vst.msk [vmem:[%s1061_s4 + $0x40] sm:$0xff] %vm21_vm0, %v573_v33 }
   0xa   :  { %306 = vperm.xlu0 %569, %v284_v6   ;;  %v295_v24 = vld [vmem:[%s1059_s3 + $0x60] sm:$0xff]  ;;  %v528_v29 = vld [vmem:[%s1060_s0 + $0x8] sm:$0xff]  ;;  %v530_v30 = vld [vmem:[%s1060_s0 + $0x18] sm:$0xff]  ;;  %31 = vst.msk [vmem:[%s1061_s4 + $0x48] sm:$0xff] %vm21_vm0, %v573_v33 }
   0xb   :  { %184 = vmatpush.bf16.msra.mxu0 %v540_v5  ;;  %549 = vmatpush.bf16.msra.mxu1 %v540_v5  ;;  %v532_v31 = vld [vmem:[%s1060_s0 + $0x28] sm:$0xff]  ;;  %v534_v32 = vld [vmem:[%s1060_s0 + $0x38] sm:$0xff]  ;;  %32 = vst.msk [vmem:[%s1061_s4 + $0x50] sm:$0xff] %vm21_vm0, %v573_v33  ;;  %v38_v40 = vld [vmem:[%s1061_s4] sm:$0xff] }
   0xc   :  { %550 = vmatpush.bf16.msra.mxu2 %v540_v5  ;;  %551 = vmatpush.bf16.msra.mxu3 %v540_v5  ;;  %33 = vst.msk [vmem:[%s1061_s4 + $0x58] sm:$0xff] %vm21_vm0, %v573_v33  ;;  %v42_v41 = vld [vmem:[%s1061_s4 + $0x20] sm:$0xff]  ;;  %v39_v51 = vld [vmem:[%s1061_s4 + $0x8] sm:$0xff] }
   0xd   :  { %316 = vperm.xlu1 %570, %v286_v8   ;;  %326 = vperm.xlu2 %571, %v288_v14   ;;  %34 = vst.msk [vmem:[%s1061_s4 + $0x60] sm:$0xff] %vm21_vm0, %v573_v33  ;;  %v43_v52 = vld [vmem:[%s1061_s4 + $0x28] sm:$0xff]  ;;  %v395_v62 = vld [vmem:[%s1062_s2] sm:$0xff]  ;;  %v40_v8 = vld [vmem:[%s1061_s4 + $0x10] sm:$0xff] }
   0xe   :  { %35 = vst.msk [vmem:[%s1061_s4 + $0x68] sm:$0xff] %vm21_vm0, %v573_v33  ;;  %v399_v1 = vld [vmem:[%s1062_s2 + $0x20] sm:$0xff] }
   0xf   :  { %185 = vmatpush.bf16.msra.mxu0 %v539_v9  ;;  %552 = vmatpush.bf16.msra.mxu1 %v539_v9  ;;  %36 = vst.msk [vmem:[%s1061_s4 + $0x70] sm:$0xff] %vm21_vm0, %v573_v33 }
  0x10   :  { %553 = vmatpush.bf16.msra.mxu2 %v539_v9  ;;  %554 = vmatpush.bf16.msra.mxu3 %v539_v9  ;;  %37 = vst.msk [vmem:[%s1061_s4 + $0x78] sm:$0xff] %vm21_vm0, %v573_v33  ;;  %v46_v47 = vld [vmem:[%s1061_s4 + $0x40] sm:$0xff]  ;;  %v400_v33 = vld [vmem:[%s1062_s2 + $0x28] sm:$0xff] }
  0x11   :  { %v47_v4 = vld [vmem:[%s1061_s4 + $0x48] sm:$0xff] }
  0x12   :  { %331 = vperm.xlu0 %569, %v289_v11  }
  0x13   :  { %186 = vmatpush.bf16.msra.mxu0 %v538_v10  ;;  %555 = vmatpush.bf16.msra.mxu1 %v538_v10 }
  0x14   :  { %556 = vmatpush.bf16.msra.mxu2 %v538_v10  ;;  %557 = vmatpush.bf16.msra.mxu3 %v538_v10  ;;  %v50_v48 = vld [vmem:[%s1061_s4 + $0x60] sm:$0xff] }
  0x15   :  { %336 = vperm.xlu1 %570, %v290_v12   ;;  %341 = vperm.xlu2 %571, %v291_v18   ;;  %v51_v5 = vld [vmem:[%s1061_s4 + $0x68] sm:$0xff]  ;;  %v44_v12 = vld [vmem:[%s1061_s4 + $0x30] sm:$0xff] }
  0x17   :  { %187 = vmatpush.bf16.msra.mxu0 %v537_v13  ;;  %558 = vmatpush.bf16.msra.mxu1 %v537_v13 }
  0x18   :  { %559 = vmatpush.bf16.msra.mxu2 %v537_v13  ;;  %560 = vmatpush.bf16.msra.mxu3 %v537_v13 }
  0x1a   :  { %346 = vperm.xlu0 %569, %v292_v16  }
  0x1b   :  { %188 = vmatpush.bf16.msra.mxu0 %v536_v15  ;;  %561 = vmatpush.bf16.msra.mxu1 %v536_v15 }
  0x1c   :  { %562 = vmatpush.bf16.msra.mxu2 %v536_v15  ;;  %563 = vmatpush.bf16.msra.mxu3 %v536_v15 }
  0x1d   :  { %351 = vperm.xlu1 %570, %v293_v17   ;;  %356 = vperm.xlu2 %571, %v294_v26  }
  0x1f   :  { %189 = vmatpush.bf16.msra.mxu0 %v535_v19  ;;  %564 = vmatpush.bf16.msra.mxu1 %v535_v19 }
  0x20   :  { %565 = vmatpush.bf16.msra.mxu2 %v535_v19  ;;  %566 = vmatpush.bf16.msra.mxu3 %v535_v19 }
  0x22   :  { %190 = vmatmul.bf16.vlgmr.msra.gmra.mxu0 %v527_v20  ;;  %200 = vmatmul.bf16.vlgmr.msra.gmra.mxu1 %v529_v21  ;;  %v403_v20 = vld [vmem:[%s1062_s2 + $0x40] sm:$0xff] }
  0x23   :  { %210 = vmatmul.bf16.vlgmr.msra.gmra.mxu2 %v531_v22  ;;  %220 = vmatmul.bf16.vlgmr.msra.gmra.mxu3 %v533_v23 }
  0x24   :  { %361 = vperm.xlu0 %569, %v295_v24  }
  0x25   :  { %366 = vperm.xlu1 %570, %v296_v25   ;;  %371 = vperm.xlu2 %571, %v297_v28   ;;  %v407_v25 = vld [vmem:[%s1062_s2 + $0x60] sm:$0xff] }
  0x2c   :  { %376 = vperm.xlu0 %569, %v298_v27  }
  0x32   :  { %195 = vmatmul.bf16.gmra.mxu0 %v528_v29  ;;  %205 = vmatmul.bf16.gmra.mxu1 %v530_v30  ;;  %v396_v29 = vld [vmem:[%s1062_s2 + $0x8] sm:$0xff] }
  0x33   :  { %215 = vmatmul.bf16.gmra.mxu2 %v532_v31  ;;  %225 = vmatmul.bf16.gmra.mxu3 %v534_v32 }
  0x5f   :  { %v322_v37 = vpop.permute.xlu2 %321 }
  0x67   :  { %v777_v46 = vpop.permute.xlu2 %326 }
  0x6f   :  { %v342_v6 = vpop.permute.xlu2 %341 }
  0x74   :  { %v302_v34 = vpop.permute.xlu0 %301 }
  0x77   :  { %v761_v36 = vpop.permute.xlu1 %311 }
  0x7c   :  { %v759_v35 = vpop.permute.xlu0 %306 }
  0x7f   :  { %v765_v39 = vpop.permute.xlu1 %316 }
  0x84   :  { %v763_v38 = vpop.permute.xlu0 %331 }
  0x87   :  { %v791_v50 = vpop.permute.xlu1 %336 }
  0x8c   :  { %v789_v49 = vpop.permute.xlu0 %346 }
  0x8f   :  { %v839_v18 = vpop.permute.xlu1 %351 }
  0x96   :  { %v362_v22 = vpop.permute.xlu0 %361 }
  0x9f   :  { %v191_v42 = vpop.f32.mrf.mxu0  ;;  %v201_v43 = vpop.f32.mrf.mxu1 }
  0xa0   :  { %v231_v44 = vadd.f32 %v191_v42, %v38_v40  ;;  %v235_v45 = vadd.f32 %v201_v43, %v42_v41  ;;  %v52_v42 = vld [vmem:[%s1061_s4 + $0x70] sm:$0xff] }
  0xa2   :  { %248 = vst.msk [vmem:[%s1061_s4] sm:$0xff] %vm21_vm0, %v231_v44 }
  0xa3   :  { %252 = vst.msk [vmem:[%s1061_s4 + $0x20] sm:$0xff] %vm21_vm0, %v235_v45 }
  0xa6   :  { %v211_v53 = vpop.f32.mrf.mxu2  ;;  %v221_v54 = vpop.f32.mrf.mxu3 }
  0xa7   :  { %v239_v55 = vadd.f32 %v211_v53, %v46_v47  ;;  %v243_v56 = vadd.f32 %v221_v54, %v50_v48  ;;  %v193_v57 = vpop.f32.mrf.mxu0  ;;  %v203_v58 = vpop.f32.mrf.mxu1  ;;  %v41_v47 = vld [vmem:[%s1061_s4 + $0x18] sm:$0xff] }
  0xa8   :  { %v232_v59 = vadd.f32 %v193_v57, %v39_v51  ;;  %v236_v60 = vadd.f32 %v203_v58, %v43_v52  ;;  %v45_v53 = vld [vmem:[%s1061_s4 + $0x38] sm:$0xff]  ;;  %v911_v57 = vpop.permute.xlu2 %356 }
  0xa9   :  { %v267_v61 = vld [vmem:[%s1061_s4] sm:$0xff]  ;;  %256 = vst.msk [vmem:[%s1061_s4 + $0x40] sm:$0xff] %vm21_vm0, %v239_v55 }
  0xaa   :  { %v379_v63 = vmul.f32 %v302_v34, %v267_v61  ;;  %v271_v0 = vld [vmem:[%s1061_s4 + $0x20] sm:$0xff]  ;;  %260 = vst.msk [vmem:[%s1061_s4 + $0x60] sm:$0xff] %vm21_vm0, %v243_v56  ;;  %v367_v61 = vpop.permute.xlu1 %366 }
  0xab   :  { %v383_v2 = vmul.f32 %v322_v37, %v271_v0  ;;  %249 = vst.msk [vmem:[%s1061_s4 + $0x8] sm:$0xff] %vm21_vm0, %v232_v59  ;;  %v404_v59 = vld [vmem:[%s1062_s2 + $0x48] sm:$0xff] }
  0xac   :  { %v411_v3 = vadd.f32 %v395_v62, %v379_v63  ;;  %253 = vst.msk [vmem:[%s1061_s4 + $0x28] sm:$0xff] %vm21_vm0, %v236_v60  ;;  %v408_v0 = vld [vmem:[%s1062_s2 + $0x68] sm:$0xff] }
  0xad   :  { %v415_v7 = vadd.f32 %v399_v1, %v383_v2 }
  0xae   :  { %v427_v9 = vmax.f32 %v411_v3, 0.0  ;;  %v213_v10 = vpop.f32.mrf.mxu2  ;;  %v223_v11 = vpop.f32.mrf.mxu3 }
  0xaf   :  { %v431_v13 = vmax.f32 %v415_v7, 0.0  ;;  %v240_v14 = vadd.f32 %v213_v10, %v47_v4  ;;  %v244_v15 = vadd.f32 %v223_v11, %v51_v5  ;;  %v196_v16 = vpop.f32.mrf.mxu0  ;;  %v206_v17 = vpop.f32.mrf.mxu1  ;;  %v397_v4 = vld [vmem:[%s1062_s2 + $0x10] sm:$0xff] }
  0xb0   :  { %443 = vst.msk [vmem:[%s1061_s4] sm:$0xff] %vm21_vm0, %v427_v9  ;;  %v275_v19 = vld [vmem:[%s1061_s4 + $0x40] sm:$0xff]  ;;  %v233_v21 = vadd.f32 %v196_v16, %v40_v8  ;;  %v237_v26 = vadd.f32 %v206_v17, %v44_v12  ;;  %v401_v7 = vld [vmem:[%s1062_s2 + $0x30] sm:$0xff] }
  0xb1   :  { %447 = vst.msk [vmem:[%s1061_s4 + $0x20] sm:$0xff] %vm21_vm0, %v431_v13  ;;  %v387_v23 = vmul.f32 %v342_v6, %v275_v19  ;;  %v279_v24 = vld [vmem:[%s1061_s4 + $0x60] sm:$0xff] }
  0xb2   :  { %v391_v27 = vmul.f32 %v362_v22, %v279_v24  ;;  %v268_v28 = vld [vmem:[%s1061_s4 + $0x8] sm:$0xff]  ;;  %257 = vst.msk [vmem:[%s1061_s4 + $0x48] sm:$0xff] %vm21_vm0, %v240_v14  ;;  %v405_v22 = vld [vmem:[%s1062_s2 + $0x50] sm:$0xff] }
  0xb3   :  { %v419_v30 = vadd.f32 %v403_v20, %v387_v23  ;;  %v380_v31 = vmul.f32 %v759_v35, %v268_v28  ;;  %v272_v32 = vld [vmem:[%s1061_s4 + $0x28] sm:$0xff]  ;;  %261 = vst.msk [vmem:[%s1061_s4 + $0x68] sm:$0xff] %vm21_vm0, %v244_v15  ;;  %v48_v35 = vld [vmem:[%s1061_s4 + $0x50] sm:$0xff]  ;;  %v372_v23 = vpop.permute.xlu2 %371 }
  0xb4   :  { %v423_v34 = vadd.f32 %v407_v25, %v391_v27  ;;  %v384_v37 = vmul.f32 %v777_v46, %v272_v32  ;;  %250 = vst.msk [vmem:[%s1061_s4 + $0x10] sm:$0xff] %vm21_vm0, %v233_v21  ;;  %v402_v32 = vld [vmem:[%s1062_s2 + $0x38] sm:$0xff] }
  0xb5   :  { %v435_v40 = vmax.f32 %v419_v30, 0.0  ;;  %v412_v41 = vadd.f32 %v396_v29, %v380_v31  ;;  %254 = vst.msk [vmem:[%s1061_s4 + $0x30] sm:$0xff] %vm21_vm0, %v237_v26  ;;  %v409_v26 = vld [vmem:[%s1062_s2 + $0x70] sm:$0xff]  ;;  %v398_v29 = vld [vmem:[%s1062_s2 + $0x18] sm:$0xff] }
  0xb6   :  { %v439_v43 = vmax.f32 %v423_v34, 0.0  ;;  %v416_v44 = vadd.f32 %v400_v33, %v384_v37  ;;  %v216_v45 = vpop.f32.mrf.mxu2  ;;  %v226_v46 = vpop.f32.mrf.mxu3 }
  0xb7   :  { %451 = vst.msk [vmem:[%s1061_s4 + $0x40] sm:$0xff] %vm21_vm0, %v435_v40  ;;  %v428_v48 = vmax.f32 %v412_v41, 0.0  ;;  %v241_v51 = vadd.f32 %v216_v45, %v48_v35  ;;  %v198_v52 = vpop.f32.mrf.mxu0  ;;  %v208_v54 = vpop.f32.mrf.mxu1  ;;  %v245_v56 = vadd.f32 %v226_v46, %v52_v42 }
  0xb8   :  { %455 = vst.msk [vmem:[%s1061_s4 + $0x60] sm:$0xff] %vm21_vm0, %v439_v43  ;;  %v432_v55 = vmax.f32 %v416_v44, 0.0  ;;  %v234_v60 = vadd.f32 %v198_v52, %v41_v47  ;;  %v238_v1 = vadd.f32 %v208_v54, %v45_v53  ;;  %v406_v43 = vld [vmem:[%s1062_s2 + $0x58] sm:$0xff]  ;;  %v377_v44 = vpop.permute.xlu0 %376 }
  0xb9   :  { %444 = vst.msk [vmem:[%s1061_s4 + $0x8] sm:$0xff] %vm21_vm0, %v428_v48  ;;  %v276_v58 = vld [vmem:[%s1061_s4 + $0x48] sm:$0xff]  ;;  %v410_v47 = vld [vmem:[%s1062_s2 + $0x78] sm:$0xff] }
  0xba   :  { %448 = vst.msk [vmem:[%s1061_s4 + $0x28] sm:$0xff] %vm21_vm0, %v432_v55  ;;  %v388_v62 = vmul.f32 %v789_v49, %v276_v58  ;;  %v280_v63 = vld [vmem:[%s1061_s4 + $0x68] sm:$0xff] }
  0xbb   :  { %v392_v2 = vmul.f32 %v367_v61, %v280_v63  ;;  %v269_v3 = vld [vmem:[%s1061_s4 + $0x10] sm:$0xff]  ;;  %258 = vst.msk [vmem:[%s1061_s4 + $0x50] sm:$0xff] %vm21_vm0, %v241_v51 }
  0xbc   :  { %v420_v49 = vadd.f32 %v404_v59, %v388_v62  ;;  %v381_v5 = vmul.f32 %v761_v36, %v269_v3  ;;  %v273_v6 = vld [vmem:[%s1061_s4 + $0x30] sm:$0xff]  ;;  %262 = vst.msk [vmem:[%s1061_s4 + $0x70] sm:$0xff] %vm21_vm0, %v245_v56  ;;  %v49_v36 = vld [vmem:[%s1061_s4 + $0x58] sm:$0xff] }
  0xbd   :  { %v424_v8 = vadd.f32 %v408_v0, %v392_v2  ;;  %v385_v9 = vmul.f32 %v763_v38, %v273_v6  ;;  %251 = vst.msk [vmem:[%s1061_s4 + $0x18] sm:$0xff] %vm21_vm0, %v234_v60  ;;  %v53_v38 = vld [vmem:[%s1061_s4 + $0x78] sm:$0xff] }
  0xbe   :  { %v436_v10 = vmax.f32 %v420_v49, 0.0  ;;  %v413_v11 = vadd.f32 %v397_v4, %v381_v5  ;;  %255 = vst.msk [vmem:[%s1061_s4 + $0x38] sm:$0xff] %vm21_vm0, %v238_v1  ;;  %v218_v12 = vpop.f32.mrf.mxu2  ;;  %v228_v13 = vpop.f32.mrf.mxu3 }
  0xbf   :  { %v440_v14 = vmax.f32 %v424_v8, 0.0  ;;  %v417_v15 = vadd.f32 %v401_v7, %v385_v9  ;;  %v242_v17 = vadd.f32 %v218_v12, %v49_v36  ;;  %v246_v20 = vadd.f32 %v228_v13, %v53_v38 }
  0xc0   :  { %452 = vst.msk [vmem:[%s1061_s4 + $0x48] sm:$0xff] %vm21_vm0, %v436_v10  ;;  %v429_v16 = vmax.f32 %v413_v11, 0.0 }
  0xc1   :  { %456 = vst.msk [vmem:[%s1061_s4 + $0x68] sm:$0xff] %vm21_vm0, %v440_v14  ;;  %v433_v19 = vmax.f32 %v417_v15, 0.0 }
  0xc2   :  { %445 = vst.msk [vmem:[%s1061_s4 + $0x10] sm:$0xff] %vm21_vm0, %v429_v16  ;;  %v277_v21 = vld [vmem:[%s1061_s4 + $0x50] sm:$0xff] }
  0xc3   :  { %449 = vst.msk [vmem:[%s1061_s4 + $0x30] sm:$0xff] %vm21_vm0, %v433_v19  ;;  %v389_v24 = vmul.f32 %v839_v18, %v277_v21  ;;  %v281_v25 = vld [vmem:[%s1061_s4 + $0x70] sm:$0xff] }
  0xc4   :  { %v393_v27 = vmul.f32 %v372_v23, %v281_v25  ;;  %v270_v28 = vld [vmem:[%s1061_s4 + $0x18] sm:$0xff]  ;;  %259 = vst.msk [vmem:[%s1061_s4 + $0x58] sm:$0xff] %vm21_vm0, %v242_v17 }
  0xc5   :  { %v421_v18 = vadd.f32 %v405_v22, %v389_v24  ;;  %v382_v30 = vmul.f32 %v765_v39, %v270_v28  ;;  %v274_v31 = vld [vmem:[%s1061_s4 + $0x38] sm:$0xff]  ;;  %263 = vst.msk [vmem:[%s1061_s4 + $0x78] sm:$0xff] %vm21_vm0, %v246_v20 }
  0xc6   :  { %v425_v33 = vadd.f32 %v409_v26, %v393_v27  ;;  %v386_v34 = vmul.f32 %v791_v50, %v274_v31 }
  0xc7   :  { %v437_v37 = vmax.f32 %v421_v18, 0.0  ;;  %v414_v35 = vadd.f32 %v398_v29, %v382_v30 }
  0xc8   :  { %v441_v40 = vmax.f32 %v425_v33, 0.0  ;;  %v418_v39 = vadd.f32 %v402_v32, %v386_v34 }
  0xc9   :  { %453 = vst.msk [vmem:[%s1061_s4 + $0x50] sm:$0xff] %vm21_vm0, %v437_v37  ;;  %v430_v41 = vmax.f32 %v414_v35, 0.0 }
  0xca   :  { %457 = vst.msk [vmem:[%s1061_s4 + $0x70] sm:$0xff] %vm21_vm0, %v441_v40  ;;  %v434_v42 = vmax.f32 %v418_v39, 0.0 }
  0xcb   :  { %446 = vst.msk [vmem:[%s1061_s4 + $0x18] sm:$0xff] %vm21_vm0, %v430_v41  ;;  %v278_v50 = vld [vmem:[%s1061_s4 + $0x58] sm:$0xff] }
  0xcc   :  { %450 = vst.msk [vmem:[%s1061_s4 + $0x38] sm:$0xff] %vm21_vm0, %v434_v42  ;;  %v390_v45 = vmul.f32 %v911_v57, %v278_v50  ;;  %v282_v46 = vld [vmem:[%s1061_s4 + $0x78] sm:$0xff] }
  0xcd   :  { %v394_v48 = vmul.f32 %v377_v44, %v282_v46 }
  0xce   :  { %v422_v51 = vadd.f32 %v406_v43, %v390_v45 }
  0xcf   :  { %v426_v52 = vadd.f32 %v410_v47, %v394_v48 }
  0xd0   :  { %v438_v53 = vmax.f32 %v422_v51, 0.0 }
  0xd1   :  { %v442_v54 = vmax.f32 %v426_v52, 0.0 }
  0xd2   :  { %454 = vst.msk [vmem:[%s1061_s4 + $0x58] sm:$0xff] %vm21_vm0, %v438_v53 }
  0xd3   :  { %458 = vst.msk [vmem:[%s1061_s4 + $0x78] sm:$0xff] %vm21_vm0, %v442_v54 }

// kernel: model_forward.5
= control target key start
LH: loop header
LB: loop body
LE: loop exit
PB: predicated region body
PF: predicated region fallthrough
CT: control target
= control target key end

     0   :  { %s49_s0 = inlined_call_operand.vmem [shape: f32[8,128], index: 0, kind: input, shape index: {}]   ;;  %s50_s1 = inlined_call_operand.vmem [shape: f32[8,128], index: 1, kind: input, shape index: {}]   ;;  %s51_s2 = inlined_call_operand.vmem [shape: f32[1,128], index: 2, kind: output, shape index: {}]  }
   0x1   :  { %v11_v0 = vld [vmem:[%s49_s0] sm:$0xff] }
   0x2   :  { %v12_v1 = vld [vmem:[%s50_s1] sm:$0xff] }
   0x3   :  { %v13_v2 = vmul.f32 %v12_v1, %v11_v0 }
   0x5   :  { %v14_v3 = vrot.slane %v13_v2, 4 }
   0x7   :  { %v15_v4 = vadd.f32 %v14_v3, %v13_v2 }
   0x9   :  { %v16_v5 = vrot.slane %v15_v4, 2 }
   0xb   :  { %v17_v6 = vadd.f32 %v16_v5, %v15_v4 }
   0xd   :  { %v18_v7 = vrot.slane %v17_v6, 1 }
   0xf   :  { %v19_v8 = vadd.f32 %v18_v7, %v17_v6 }
  0x11   :  { %20 = vst [vmem:[%s51_s2] sm:$0x1] %v19_v8 }

</bundles_post_ra>
